<compile_context>
chip_gen: v5e
topology: v5e:2x2
jax: 0.10.0
libtpu: 0.0.40
codegen_flags: <defaults>
</compile_context>

<pallas_src>
import functools

import jax
import jax.numpy as jnp
from jax.experimental import pallas as pl
from jax.experimental.pallas import tpu as pltpu

IN_IMG = 1000
IN_META = 2
IN_ALL = IN_IMG + IN_META      # 1002
H1, H2, H3 = 100, 10, 1
M1, M2 = 2, 1
HPAD = 128                     # lane-dense padded hidden width


# ---------------------------------------------------------------------------
# Chip detection / defaults
# ---------------------------------------------------------------------------
def _device_kind():
    try:
        return jax.devices()[0].device_kind.lower()
    except Exception:
        return ""


def _is_v5e(dk):
    return ("v5 lite" in dk) or ("v5e" in dk) or ("v5lite" in dk)


def _default_tb():
    dk = _device_kind()
    if "v6" in dk or "v7" in dk:
        return 2048            # ~17 MB peak VMEM, fits the 32 MiB default budget
    return 1024                # v5e (16 MiB default scoped VMEM) / unknown chips


def _default_compute_dtype():
    # On v5e the f32 MXU path is the marginal bottleneck; bf16 operands with
    # f32 accumulation return the kernel to HBM-bound.  Neutral on v6e/v7x.
    return jnp.bfloat16 if _is_v5e(_device_kind()) else jnp.float32


# ---------------------------------------------------------------------------
# Kernel
# ---------------------------------------------------------------------------
def _fcn_kernel(x_ref, w1_ref, b1_ref, w2_ref, b2_ref, wt_ref, b3_ref, out_ref):
    cdt = w1_ref.dtype                                          # f32, or bf16 on v5e
    # Layer 1: fused image (1000->100) + meta (2->2), padded to 128 cols.
    h1 = jax.nn.sigmoid(
        jnp.dot(x_ref[...].astype(cdt), w1_ref[...],
                preferred_element_type=jnp.float32) + b1_ref[...])     # (TB, 128)
    # Layer 2: fused image (100->10) + meta (2->1), padded to 128 cols.
    h2 = jax.nn.sigmoid(
        jnp.dot(h1.astype(cdt), w2_ref[...],
                preferred_element_type=jnp.float32) + b2_ref[...])     # (TB, 128)
    # Lane-dense tail: one XLU transpose + one tiny MXU dot gives row 0 =
    # image 10->1 projection and row 1 = meta-output lane select, as (2, TB).
    tails = jnp.dot(wt_ref[...], h2.T, preferred_element_type=jnp.float32)  # (2, TB)
    x1 = jax.nn.sigmoid(tails[0:1, :] + b3_ref[...])            # image head, (1, TB)
    x2 = tails[1:2, :]                                          # meta head (already sigmoid'ed)
    out_ref[...] = jax.nn.sigmoid(x1 * x2)                      # (1, TB) lane-dense store


# ---------------------------------------------------------------------------
# Packing (one-time, outside the jitted per-call path)
# ---------------------------------------------------------------------------
def pack_params(params, compute_dtype=None):
    """PyTorch-shaped params -> lane-dense fused weights.

    Columns 0..99 of layers 1/2 carry the image encoder, columns 100..101
    (layer 1) and column 10 (layer 2) carry the meta encoder; everything else
    is zero so the two paths never mix.  Padded pre-activations come out as
    sigmoid(0)=0.5 but are masked by zero weights downstream.  `wt` packs the
    image 10->1 weights (row 0) and a one-hot selector for the meta output
    column (row 1) so the tail is a single (2, TB) MXU dot.
    """
    if compute_dtype is None:
        compute_dtype = _default_compute_dtype()
    f32 = jnp.float32
    w1 = jnp.zeros((IN_ALL, HPAD), f32)
    w1 = w1.at[:IN_IMG, :H1].set(params["w1"].T.astype(f32))
    w1 = w1.at[IN_IMG:, H1:H1 + M1].set(params["mw1"].T.astype(f32))
    b1 = jnp.zeros((1, HPAD), f32)
    b1 = b1.at[0, :H1].set(params["b1"])
    b1 = b1.at[0, H1:H1 + M1].set(params["mb1"])

    w2 = jnp.zeros((HPAD, HPAD), f32)
    w2 = w2.at[:H1, :H2].set(params["w2"].T.astype(f32))
    w2 = w2.at[H1:H1 + M1, H2:H2 + M2].set(params["mw2"].T.astype(f32))
    b2 = jnp.zeros((1, HPAD), f32)
    b2 = b2.at[0, :H2].set(params["b2"])
    b2 = b2.at[0, H2:H2 + M2].set(params["mb2"])

    wt = jnp.zeros((2, HPAD), f32)
    wt = wt.at[0, :H2].set(params["w3"][0])          # image 10 -> 1
    wt = wt.at[1, H2].set(1.0)                       # picks the meta output column
    b3 = params["b3"].reshape(1, 1).astype(f32)

    return (w1.astype(compute_dtype), b1, w2.astype(compute_dtype), b2, wt, b3)


# ---------------------------------------------------------------------------
# Forward wrapper
# ---------------------------------------------------------------------------
def _round_up(v, m):
    return ((v + m - 1) // m) * m


def _pick_tb(batch, tb):
    # Keep at least two grid steps when the batch allows it so both of v7x's
    # TensorCores get tiles; stay a multiple of 8 sublanes.
    per_half = _round_up(max(1, -(-batch // 2)), 8)
    return max(8, min(int(tb), per_half))


@functools.partial(jax.jit, static_argnames=("tb",))
def _forward(x, packed, *, tb):
    B = x.shape[0]
    TB = _pick_tb(B, tb)
    n_tiles = pl.cdiv(B, TB)
    # No jnp.pad of x for ragged B (that would add a full extra HBM pass over
    # the dominant stream): Pallas clamps the last partial input block, tail
    # rows compute garbage, and the padded output rows are sliced off below.
    # Rows are independent, so garbage cannot contaminate valid rows.
    w1, b1, w2, b2, wt, b3 = packed

    batch_spec = pl.BlockSpec((TB, IN_ALL), lambda i: (i, 0))
    out_spec = pl.BlockSpec((None, 1, TB), lambda i: (i, 0, 0))   # lane-dense row per tile

    def resident(shape):                    # fetched once, stays in VMEM
        return pl.BlockSpec(shape, lambda i: (0, 0))

    out = pl.pallas_call(
        _fcn_kernel,
        out_shape=jax.ShapeDtypeStruct((n_tiles, 1, TB), jnp.float32),
        grid=(n_tiles,),
        in_specs=[
            batch_spec,
            resident(w1.shape), resident(b1.shape),
            resident(w2.shape), resident(b2.shape),
            resident(wt.shape), resident(b3.shape),
        ],
        out_specs=out_spec,
        compiler_params=pltpu.CompilerParams(
            dimension_semantics=("parallel",)),
    )(x, w1, b1, w2, b2, wt, b3)

    return out.reshape(n_tiles * TB, 1)[:B]


def simple_fcn_forward(x, packed, tb=None):
    """x: (B, 1002) float32.  packed: output of pack_params().  Returns (B, 1)."""
    if tb is None:
        tb = _default_tb()
    return _forward(x, packed, tb=int(tb))


# ---------------------------------------------------------------------------
# Init + reference (PyTorch semantics)
# ---------------------------------------------------------------------------
def init_params(key):
    """Deterministic init matching PyTorch nn.Linear default:
    U(-1/sqrt(fan_in), 1/sqrt(fan_in)) for both weight and bias."""
    def linear(key, fan_in, fan_out):
        kw, kb = jax.random.split(key)
        bound = 1.0 / jnp.sqrt(fan_in)
        w = jax.random.uniform(kw, (fan_out, fan_in), jnp.float32, -bound, bound)
        b = jax.random.uniform(kb, (fan_out,), jnp.float32, -bound, bound)
        return w, b

    keys = jax.random.split(key, 5)
    w1, b1 = linear(keys[0], IN_IMG, H1)
    w2, b2 = linear(keys[1], H1, H2)
    w3, b3 = linear(keys[2], H2, H3)
    mw1, mb1 = linear(keys[3], IN_META, M1)
    mw2, mb2 = linear(keys[4], IN_META, M2) if False else linear(keys[4], M1, M2)
    return dict(w1=w1, b1=b1, w2=w2, b2=b2, w3=w3, b3=b3,
                mw1=mw1, mb1=mb1, mw2=mw2, mb2=mb2)


def _reference(x, p):
    """Pure-JAX reference (PyTorch semantics) for the correctness check."""
    x1, x2 = x[:, :-2], x[:, -2:]
    h = jax.nn.sigmoid(x1 @ p["w1"].T + p["b1"])
    h = jax.nn.sigmoid(h @ p["w2"].T + p["b2"])
    h = jax.nn.sigmoid(h @ p["w3"].T + p["b3"])
    m = jax.nn.sigmoid(x2 @ p["mw1"].T + p["mb1"])
    m = jax.nn.sigmoid(m @ p["mw2"].T + p["mb2"])
    return jax.nn.sigmoid(h * m)


if __name__ == "__main__":
    key = jax.random.PRNGKey(0)
    kx, kx2, kp = jax.random.split(key, 3)

    params = init_params(kp)
    cdt = _default_compute_dtype()                 # bf16 only on v5e
    packed = pack_params(params, compute_dtype=cdt)
    tol = 1e-5 if cdt == jnp.float32 else 1e-2     # bf16 operands loosen the check

    # Case 1: B divisible by the tile -> 2-step grid, no padding anywhere.
    B = 16
    x = jax.random.normal(kx, (B, IN_ALL), jnp.float32)
    out = jax.block_until_ready(simple_fcn_forward(x, packed, tb=8))
    ref = _reference(x, params)
    assert out.shape == (B, 1), out.shape
    assert jnp.allclose(out, ref, atol=tol, rtol=tol), "mismatch vs reference"

    # Case 2: ragged B -> exercises the clamped last input block (no jnp.pad).
    B2 = 13
    x2 = jax.random.normal(kx2, (B2, IN_ALL), jnp.float32)
    out2 = jax.block_until_ready(simple_fcn_forward(x2, packed, tb=8))
    ref2 = _reference(x2, params)
    assert out2.shape == (B2, 1), out2.shape
    assert jnp.allclose(out2, ref2, atol=tol, rtol=tol), "mismatch (ragged B)"

    print("KERNEL_OK")
</pallas_src>

<mosaic_0001>
module attributes {stable_mosaic.version = 11 : i64} {
  func.func @_fcn_kernel(%arg0: i32, %arg1: memref<8x1002xf32, #tpu.memory_space<vmem>>, %arg2: memref<1002x128xf32, #tpu.memory_space<vmem>>, %arg3: memref<1x128xf32, #tpu.memory_space<vmem>>, %arg4: memref<128x128xf32, #tpu.memory_space<vmem>>, %arg5: memref<1x128xf32, #tpu.memory_space<vmem>>, %arg6: memref<2x128xf32, #tpu.memory_space<vmem>>, %arg7: memref<1x1xf32, #tpu.memory_space<vmem>>, %arg8: memref<1x1x8xf32, #tpu.memory_space<vmem>>) attributes {dimension_semantics = [#tpu.dimension_semantics<parallel>], iteration_bounds = array<i64: 2>, scalar_prefetch = 0 : i64, scratch_operands = 0 : i64, tpu.core_type = #tpu.core_type<tc>, window_params = [{transform_indices = @transform_0, window_bounds = array<i64: 8, 1002>}, {pipeline_mode = #tpu.pipeline_mode<synchronous>, transform_indices = @transform_1, window_bounds = array<i64: 1002, 128>}, {pipeline_mode = #tpu.pipeline_mode<synchronous>, transform_indices = @transform_2, window_bounds = array<i64: 1, 128>}, {pipeline_mode = #tpu.pipeline_mode<synchronous>, transform_indices = @transform_3, window_bounds = array<i64: 128, 128>}, {pipeline_mode = #tpu.pipeline_mode<synchronous>, transform_indices = @transform_4, window_bounds = array<i64: 1, 128>}, {pipeline_mode = #tpu.pipeline_mode<synchronous>, transform_indices = @transform_5, window_bounds = array<i64: 2, 128>}, {pipeline_mode = #tpu.pipeline_mode<synchronous>, transform_indices = @transform_6, window_bounds = array<i64: 1, 1>}, {transform_indices = @transform_7, window_bounds = array<i64: 1, 1, 8>}]} {
    %c0 = arith.constant 0 : index
    %c0_0 = arith.constant 0 : index
    %0 = vector.load %arg1[%c0, %c0_0] : memref<8x1002xf32, #tpu.memory_space<vmem>>, vector<8x1002xf32>
    %c0_1 = arith.constant 0 : index
    %c0_2 = arith.constant 0 : index
    %1 = vector.load %arg2[%c0_1, %c0_2] : memref<1002x128xf32, #tpu.memory_space<vmem>>, vector<1002x128xf32>
    %cst = arith.constant dense<0.000000e+00> : vector<8x128xf32>
    %2 = tpu.matmul %0, %1, %cst {dimension_numbers = #tpu.dot_dimension_numbers<[1], [0], [0], [1], [0, 0, 1, 1], [], []>} : vector<8x1002xf32>, vector<1002x128xf32>, vector<8x128xf32> -> vector<8x128xf32>
    %c0_3 = arith.constant 0 : index
    %c0_4 = arith.constant 0 : index
    %3 = vector.load %arg3[%c0_3, %c0_4] : memref<1x128xf32, #tpu.memory_space<vmem>>, vector<1x128xf32>
    %4 = vector.broadcast %3 : vector<1x128xf32> to vector<8x128xf32>
    %5 = arith.addf %2, %4 : vector<8x128xf32>
    %6 = arith.negf %5 : vector<8x128xf32>
    %7 = math.exp %6 : vector<8x128xf32>
    %cst_5 = arith.constant 1.000000e+00 : f32
    %8 = vector.broadcast %cst_5 : f32 to vector<8x128xf32>
    %9 = arith.addf %8, %7 : vector<8x128xf32>
    %10 = arith.divf %8, %9 : vector<8x128xf32>
    %c0_6 = arith.constant 0 : index
    %c0_7 = arith.constant 0 : index
    %11 = vector.load %arg4[%c0_6, %c0_7] : memref<128x128xf32, #tpu.memory_space<vmem>>, vector<128x128xf32>
    %cst_8 = arith.constant dense<0.000000e+00> : vector<8x128xf32>
    %12 = tpu.matmul %10, %11, %cst_8 {dimension_numbers = #tpu.dot_dimension_numbers<[1], [0], [0], [1], [0, 0, 1, 1], [], []>} : vector<8x128xf32>, vector<128x128xf32>, vector<8x128xf32> -> vector<8x128xf32>
    %c0_9 = arith.constant 0 : index
    %c0_10 = arith.constant 0 : index
    %13 = vector.load %arg5[%c0_9, %c0_10] : memref<1x128xf32, #tpu.memory_space<vmem>>, vector<1x128xf32>
    %14 = vector.broadcast %13 : vector<1x128xf32> to vector<8x128xf32>
    %15 = arith.addf %12, %14 : vector<8x128xf32>
    %16 = arith.negf %15 : vector<8x128xf32>
    %17 = math.exp %16 : vector<8x128xf32>
    %cst_11 = arith.constant 1.000000e+00 : f32
    %18 = vector.broadcast %cst_11 : f32 to vector<8x128xf32>
    %19 = arith.addf %18, %17 : vector<8x128xf32>
    %20 = arith.divf %18, %19 : vector<8x128xf32>
    %c0_12 = arith.constant 0 : index
    %c0_13 = arith.constant 0 : index
    %21 = vector.load %arg6[%c0_12, %c0_13] : memref<2x128xf32, #tpu.memory_space<vmem>>, vector<2x128xf32>
    %22 = tpu.transpose %20, [1, 0] : vector<8x128xf32> -> vector<128x8xf32>
    %cst_14 = arith.constant dense<0.000000e+00> : vector<2x8xf32>
    %23 = tpu.matmul %21, %22, %cst_14 {dimension_numbers = #tpu.dot_dimension_numbers<[1], [0], [0], [1], [0, 0, 1, 1], [], []>} : vector<2x128xf32>, vector<128x8xf32>, vector<2x8xf32> -> vector<2x8xf32>
    %24 = vector.extract_strided_slice %23 {offsets = [0, 0], sizes = [1, 8], strides = [1, 1]} : vector<2x8xf32> to vector<1x8xf32>
    %c0_15 = arith.constant 0 : index
    %c0_16 = arith.constant 0 : index
    %25 = vector.load %arg7[%c0_15, %c0_16] : memref<1x1xf32, #tpu.memory_space<vmem>>, vector<1x1xf32>
    %26 = vector.broadcast %25 : vector<1x1xf32> to vector<1x8xf32>
    %27 = arith.addf %24, %26 : vector<1x8xf32>
    %28 = arith.negf %27 : vector<1x8xf32>
    %29 = math.exp %28 : vector<1x8xf32>
    %cst_17 = arith.constant 1.000000e+00 : f32
    %30 = vector.broadcast %cst_17 : f32 to vector<1x8xf32>
    %31 = arith.addf %30, %29 : vector<1x8xf32>
    %32 = arith.divf %30, %31 : vector<1x8xf32>
    %33 = vector.extract_strided_slice %23 {offsets = [1, 0], sizes = [1, 8], strides = [1, 1]} : vector<2x8xf32> to vector<1x8xf32>
    %34 = arith.mulf %32, %33 : vector<1x8xf32>
    %35 = arith.negf %34 : vector<1x8xf32>
    %36 = math.exp %35 : vector<1x8xf32>
    %cst_18 = arith.constant 1.000000e+00 : f32
    %37 = vector.broadcast %cst_18 : f32 to vector<1x8xf32>
    %38 = arith.addf %37, %36 : vector<1x8xf32>
    %39 = arith.divf %37, %38 : vector<1x8xf32>
    %c0_19 = arith.constant 0 : index
    %c0_20 = arith.constant 0 : index
    %c0_21 = arith.constant 0 : index
    %40 = vector.load %arg8[%c0_19, %c0_20, %c0_21] : memref<1x1x8xf32, #tpu.memory_space<vmem>>, vector<1x1x8xf32>
    %41 = vector.shape_cast %40 : vector<1x1x8xf32> to vector<1x8xf32>
    %42 = vector.shape_cast %39 : vector<1x8xf32> to vector<1x1x8xf32>
    tpu.vector_store %arg8[%c0_19, %c0_20, %c0_21], %42 {strides = array<i32>} : memref<1x1x8xf32, #tpu.memory_space<vmem>>, vector<1x1x8xf32>,
    return
  }
  func.func @transform_0(%arg0: i32) -> (i32, i32) {
    %c0_i32 = arith.constant 0 : i32
    %c0_i32_0 = arith.constant 0 : i32
    return %arg0, %c0_i32 : i32, i32
  }
  func.func @transform_1(%arg0: i32) -> (i32, i32) {
    %c0_i32 = arith.constant 0 : i32
    %c0_i32_0 = arith.constant 0 : i32
    %c0_i32_1 = arith.constant 0 : i32
    return %c0_i32, %c0_i32_0 : i32, i32
  }
  func.func @transform_2(%arg0: i32) -> (i32, i32) {
    %c0_i32 = arith.constant 0 : i32
    %c0_i32_0 = arith.constant 0 : i32
    %c0_i32_1 = arith.constant 0 : i32
    return %c0_i32, %c0_i32_0 : i32, i32
  }
  func.func @transform_3(%arg0: i32) -> (i32, i32) {
    %c0_i32 = arith.constant 0 : i32
    %c0_i32_0 = arith.constant 0 : i32
    %c0_i32_1 = arith.constant 0 : i32
    return %c0_i32, %c0_i32_0 : i32, i32
  }
  func.func @transform_4(%arg0: i32) -> (i32, i32) {
    %c0_i32 = arith.constant 0 : i32
    %c0_i32_0 = arith.constant 0 : i32
    %c0_i32_1 = arith.constant 0 : i32
    return %c0_i32, %c0_i32_0 : i32, i32
  }
  func.func @transform_5(%arg0: i32) -> (i32, i32) {
    %c0_i32 = arith.constant 0 : i32
    %c0_i32_0 = arith.constant 0 : i32
    %c0_i32_1 = arith.constant 0 : i32
    return %c0_i32, %c0_i32_0 : i32, i32
  }
  func.func @transform_6(%arg0: i32) -> (i32, i32) {
    %c0_i32 = arith.constant 0 : i32
    %c0_i32_0 = arith.constant 0 : i32
    %c0_i32_1 = arith.constant 0 : i32
    return %c0_i32, %c0_i32_0 : i32, i32
  }
  func.func @transform_7(%arg0: i32) -> (i32, i32, i32) {
    %c0_i32 = arith.constant 0 : i32
    %c0_i32_0 = arith.constant 0 : i32
    %c0_i32_1 = arith.constant 0 : i32
    return %arg0, %c0_i32, %c0_i32_0 : i32, i32, i32
  }
}

</mosaic_0001>

<bundles_post_ra>
// kernel: _forward.1
= control target key start
LH: loop header
LB: loop body
LE: loop exit
PB: predicated region body
PF: predicated region fallthrough
CT: control target
= control target key end

     0   :  { %s1274_s0 = inlined_call_operand.hbm [shape: f32[16,1002], index: 0, kind: input, shape index: {}]   ;;  %s1275_s1 = inlined_call_operand.hbm [shape: f32[1002,128], index: 1, kind: input, shape index: {}]   ;;  %s1276_s2 = inlined_call_operand.vmem [shape: f32[1,128], index: 2, kind: input, shape index: {}]   ;;  %s1277_s3 = inlined_call_operand.hbm [shape: f32[128,128], index: 3, kind: input, shape index: {}]   ;;  %s1278_s4 = inlined_call_operand.vmem [shape: f32[1,128], index: 4, kind: input, shape index: {}]   ;;  %s1279_s5 = inlined_call_operand.vmem [shape: f32[2,128], index: 5, kind: input, shape index: {}]   ;;  %s1280_s6 = inlined_call_operand.<no memory space> [shape: f32[1,1], index: 6, kind: input, shape index: {}]   ;;  %s1281_s7 = inlined_call_operand.vmem [shape: f32[2,1,8], index: 7, kind: output, shape index: {}]  }
   0x1   :  { %v12_v0 = vstv %s1280_s6 }
   0x2   :  { %13 = vst [vmem:[#allocation2] sm:$0x1] %v12_v0 }
   0x3   :  { %14 = vsyncpa [#allocation4], 0 }
   0x4   :  { %16 = vsyncpa [#allocation4 + $0x1], 0 }
   0x5   :  { %17 = vsyncpa [#allocation6], 0  ;;  %s1146_s26 = smov 0   ;;  %s1148_s27 = smov 0  }
   0x6   :  { %s1150_s28 = smov 0   ;;  %s1152_s29 = smov 0  }
   0x7 LB: > { %s217_s8 = sshll.u32 %s1275_s1, 4  ;;  %s1170_s9 = sadd.s32 4294967295, %s1096_s29   ;;  %s1096_s29 = sphi %s1152_s29, %s1288_s29   ;;  %s1092_s28 = sphi %s1150_s28, %s1287_s28   ;;  %s1088_s27 = sphi %s1148_s27, %s1286_s27   ;;  %s1084_s26 = sphi %s1146_s26, %s1285_s26   ;;  %s218_s8 = int_to_ptr.hbm [resolvable:$true] %s217_s8 }
   0x8   : > { %p866_p0 = scmp.ge.s32.totalorder %s1096_s29, 1  ;;  %p44_p1 = scmp.eq.s32.totalorder %s1170_s9, 0 }
   0x9   : > { %p206_p2 = scmp.lt.s32.totalorder %s1096_s29, 3  ;;  %s1098_s11 = smov [#allocation5]  }
   0xa   : > { %s219_s12 = sshll.u32 %s1098_s11, 4  ;;  %s234_s15 = sshll.u32 %s1277_s3, 4  ;;  %s220_s12 = int_to_ptr.vmem [resolvable:$true] %s219_s12  ;;  %s235_s15 = int_to_ptr.hbm [resolvable:$true] %s234_s15 }
   0xb   : > { %p1175_p3 = pnand %p866_p0, %p206_p2  ;;  %s1099_s16 = smov [#allocation7]  }
   0xc   : > { %s236_s17 = sshll.u32 %s1099_s16, 4  ;;  %s1100_s18 = smov 128   ;;  %s237_s17 = int_to_ptr.vmem [resolvable:$true] %s236_s17 }
   0xd   : > { %p896_p4 = pneg %p1175_p3  ;;  %s1101_s19 = smov 8  }
   0xe   : > { %s1187_s20 = sadd.s32 1, %s1096_s29   ;;  %s30_s22 = sadd.s32 1, %s1092_s28 }
   0xf   : > { %p897_p5 = pnand %p896_p4, %p44_p1  ;;  %s27_s21 = ssub.s32 %s1096_s29, %s1187_s20 }
  0x10   : > { %p28_p6 = scmp.eq.s32.totalorder %s27_s21, 0  ;;  %p37_p7 = scmp.ne.s32.totalorder %s1092_s28, %s1088_s27 }
  0x11   : > { %899 = dma.hbm_to_vmem [thread:$0]  (!%p897_p5), %s218_s8, 16128, %s220_s12, [#allocation6], %s1100_s18, %s1100_s18, %s1101_s19  }
  0x12   : > { %902 = dma.hbm_to_vmem [thread:$0]  (!%p897_p5), %s235_s15, 2048, %s237_s17, [#allocation6], %s1100_s18, %s1100_s18, %s1101_s19  }
  0x13   : > { %p38_p8 = scmp.eq.s32.totalorder %s1096_s29, 0  ;;  %p43_p9 = scmp.ne.s32.totalorder %s1088_s27, %s1084_s26 }
  0x14   : > { %s1198_s23 = scalar_select %p28_p6, %s1092_s28, %s30_s22  }
  0x15   : > { %p1202_p10 = por %p44_p1, %p43_p9  ;;  %p909_p11 = scmp.lt.s32.totalorder %s1096_s29, 2 }
  0x16   : > { %s259_s25 = sand.u32 1, %s1092_s28   ;;  %s885_s6 = sshll.u32 %s1096_s29, 6 }
  0x17   : > { %p39_p12 = por %p38_p8, %p37_p7  ;;  %s870_s30 = sshll.u32 %s259_s25, 6 }
  0x18   : > { %s268_s12 = scalar_lea.hbm %s1274_s0, %s885_s6  ;;  %s263_s14 = scalar_lea.vmem [#allocation3], %s870_s30 }
  0x19   : > { %s270_s13 = sshll.u32 %s268_s12, 4  ;;  %s272_s15 = sshll.u32 %s263_s14, 4  ;;  %s271_s13 = int_to_ptr.hbm [resolvable:$true] %s270_s13  ;;  %s273_s15 = int_to_ptr.vmem [resolvable:$true] %s272_s15 }
  0x1a   : > { %p1212_p13 = pnand %p909_p11, %p39_p12  ;;  %s260_s16 = scalar_lea.sflag [#allocation4], %s259_s25 }
  0x1b   : > { %s1028_s17 = sshra.s32 %s271_s13, 4  ;;  %s1035_s21 = scalar_lea.hbm %s1274_s0, 128  ;;  %s1029_s17 = int_to_ptr.hbm [resolvable:$true] %s1028_s17 }
  0x1c   : > { %s1030_s29 = scalar_lea.hbm %s1029_s17, 64  ;;  %p1032_p2 = pneg %p1212_p13 }
  0x1d   : > { %p1031_p0 = scmp.ne.s32.totalorder %s1029_s17, %s1030_s29  ;;  %p1036_p6 = scmp.lt.s32.totalorder %s1029_s17, %s1274_s0 }
  0x1e   : > { %p1037_p7 = scmp.lt.s32.totalorder %s1035_s21, %s1030_s29 }
  0x1f   : > { %p1033_p4 = pnand %p1032_p2, %p1031_p0 }
  0x20   : > { %p1038_p8 = por %p1037_p7, %p1036_p6 }
  0x21   : > { %p1034_p5 = pneg %p1033_p4 }
  0x23   : > { %p1039_p9 = pnand %p1038_p8, %p1034_p5 }
  0x25   : > { %1042 = shalt.err (!%p1039_p9)
}
  0x26   : > { %906 = dma.hbm_to_vmem [thread:$0]  (!%p1212_p13), %s271_s13, 1024, %s273_s15, %s260_s16  }
  0x27   : > { %281 = sbr.rel (%p1175_p3) target bundleno = 628 (0x274), region = 48  ;;  %s283_s25 = sand.u32 (!%p1175_p3), 1, %s1088_s27  }
  0x28   : > { %s874_s30 = sshll.u32 (!%p1175_p3), %s283_s25, 6  ;;  %s284_s8 = scalar_lea.sflag (!%p1175_p3), [#allocation4], %s283_s25 }
  0x29   : > { %s1229_s11 = scalar_lea.vmem (!%p1175_p3), [#allocation3], %s874_s30 }
  0x2c   : > { %1075 = dma.done.wait (%p1202_p10), %s284_s8, 1024  }
  0x2d   : > { %1077 = vsyncadd (%p1202_p10), %s284_s8, 4294966272 }
  0x2e   : > { %1079 = dma.done.wait (%p44_p1), [#allocation6], 18176  }
  0x2f   : > { %1081 = vsyncadd (%p44_p1), [#allocation6], 4294949120  ;;  %v385_v1 = vld [vmem:[#allocation5 + $0x178] sm:$0xff]  ;;  %v384_v3 = vld [vmem:[#allocation5 + $0x170] sm:$0xff]  ;;  %vm472_vm0 = vcmask 1041408   ;;  %vm468_vm1 = vcmask 867328  }
  0x30   : > { %v353_v2 = vld [vmem:[#allocation5 + $0x78] sm:$0xff]  ;;  %516 = vmatpush.msra.mxu2 %v385_v1  ;;  %v352_v4 = vld [vmem:[#allocation5 + $0x70] sm:$0xff]  ;;  %v383_v6 = vld [vmem:[#allocation5 + $0x168] sm:$0xff]  ;;  %p327_p1 = scmp.lt.s32.totalorder %s1170_s9, 1 }
  0x31   : > { %476 = vmatpush.msra.mxu0 %v353_v2  ;;  %v369_v5 = vld [vmem:[#allocation5 + $0xf8] sm:$0xff]  ;;  %v351_v7 = vld [vmem:[#allocation5 + $0x68] sm:$0xff]  ;;  %v368_v8 = vld [vmem:[#allocation5 + $0xf0] sm:$0xff] }
  0x32   : > { %496 = vmatpush.msra.mxu1 %v369_v5  ;;  %517 = vmatpush.msra.mxu2 %v384_v3  ;;  %v401_v9 = vld [vmem:[#allocation5 + $0x1f8] sm:$0xff]  ;;  %v367_v10 = vld [vmem:[#allocation5 + $0xe8] sm:$0xff]  ;;  %v382_v11 = vld [vmem:[#allocation5 + $0x160] sm:$0xff]  ;;  %s1290_s9 = smov (!%p327_p1, %s1170_s9), 1 }
  0x33   : > { %477 = vmatpush.msra.mxu0 %v352_v4  ;;  %536 = vmatpush.msra.mxu3 %v401_v9  ;;  %v350_v12 = vld [vmem:[#allocation5 + $0x60] sm:$0xff]  ;;  %v400_v13 = vld [vmem:[#allocation5 + $0x1f0] sm:$0xff]  ;;  %v399_v15 = vld [vmem:[#allocation5 + $0x1e8] sm:$0xff]  ;;  %s329_s17 = scalar_lea.vmem %s1281_s7, %s1290_s9 }
  0x34   : > { %497 = vmatpush.msra.mxu1 %v368_v8  ;;  %518 = vmatpush.msra.mxu2 %v383_v6  ;;  %v366_v14 = vld [vmem:[#allocation5 + $0xe0] sm:$0xff]  ;;  %v381_v16 = vld [vmem:[#allocation5 + $0x158] sm:$0xff]  ;;  %v380_v20 = vld [vmem:[#allocation5 + $0x150] sm:$0xff] }
  0x35   : > { %478 = vmatpush.msra.mxu0 %v351_v7  ;;  %537 = vmatpush.msra.mxu3 %v400_v13  ;;  %v349_v17 = vld [vmem:[#allocation5 + $0x58] sm:$0xff]  ;;  %v398_v19 = vld [vmem:[#allocation5 + $0x1e0] sm:$0xff]  ;;  %v348_v21 = vld [vmem:[#allocation5 + $0x50] sm:$0xff] }
  0x36   : > { %498 = vmatpush.msra.mxu1 %v367_v10  ;;  %519 = vmatpush.msra.mxu2 %v382_v11  ;;  %v365_v18 = vld [vmem:[#allocation5 + $0xd8] sm:$0xff]  ;;  %v364_v22 = vld [vmem:[#allocation5 + $0xd0] sm:$0xff]  ;;  %v379_v24 = vld [vmem:[#allocation5 + $0x148] sm:$0xff] }
  0x37   : > { %479 = vmatpush.msra.mxu0 %v350_v12  ;;  %538 = vmatpush.msra.mxu3 %v399_v15  ;;  %v397_v23 = vld [vmem:[#allocation5 + $0x1d8] sm:$0xff]  ;;  %v347_v25 = vld [vmem:[#allocation5 + $0x48] sm:$0xff]  ;;  %v396_v27 = vld [vmem:[#allocation5 + $0x1d0] sm:$0xff] }
  0x38   : > { %499 = vmatpush.msra.mxu1 %v366_v14  ;;  %520 = vmatpush.msra.mxu2 %v381_v16  ;;  %v363_v26 = vld [vmem:[#allocation5 + $0xc8] sm:$0xff]  ;;  %v378_v28 = vld [vmem:[#allocation5 + $0x140] sm:$0xff]  ;;  %v377_v32 = vld [vmem:[#allocation5 + $0x138] sm:$0xff] }
  0x39   : > { %480 = vmatpush.msra.mxu0 %v349_v17  ;;  %539 = vmatpush.msra.mxu3 %v398_v19  ;;  %v346_v29 = vld [vmem:[#allocation5 + $0x40] sm:$0xff]  ;;  %v395_v31 = vld [vmem:[#allocation5 + $0x1c8] sm:$0xff]  ;;  %v345_v33 = vld [vmem:[#allocation5 + $0x38] sm:$0xff] }
  0x3a   : > { %500 = vmatpush.msra.mxu1 %v365_v18  ;;  %521 = vmatpush.msra.mxu2 %v380_v20  ;;  %v362_v30 = vld [vmem:[#allocation5 + $0xc0] sm:$0xff]  ;;  %v361_v34 = vld [vmem:[#allocation5 + $0xb8] sm:$0xff]  ;;  %v376_v36 = vld [vmem:[#allocation5 + $0x130] sm:$0xff] }
  0x3b   : > { %481 = vmatpush.msra.mxu0 %v348_v21  ;;  %540 = vmatpush.msra.mxu3 %v397_v23  ;;  %v394_v35 = vld [vmem:[#allocation5 + $0x1c0] sm:$0xff]  ;;  %v344_v37 = vld [vmem:[#allocation5 + $0x30] sm:$0xff]  ;;  %v393_v39 = vld [vmem:[#allocation5 + $0x1b8] sm:$0xff] }
  0x3c   : > { %501 = vmatpush.msra.mxu1 %v364_v22  ;;  %522 = vmatpush.msra.mxu2 %v379_v24  ;;  %v360_v38 = vld [vmem:[#allocation5 + $0xb0] sm:$0xff]  ;;  %v375_v40 = vld [vmem:[#allocation5 + $0x128] sm:$0xff]  ;;  %v374_v44 = vld [vmem:[#allocation5 + $0x120] sm:$0xff] }
  0x3d   : > { %482 = vmatpush.msra.mxu0 %v347_v25  ;;  %541 = vmatpush.msra.mxu3 %v396_v27  ;;  %v343_v41 = vld [vmem:[#allocation5 + $0x28] sm:$0xff]  ;;  %v392_v43 = vld [vmem:[#allocation5 + $0x1b0] sm:$0xff]  ;;  %v342_v45 = vld [vmem:[#allocation5 + $0x20] sm:$0xff] }
  0x3e   : > { %502 = vmatpush.msra.mxu1 %v363_v26  ;;  %523 = vmatpush.msra.mxu2 %v378_v28  ;;  %v359_v42 = vld [vmem:[#allocation5 + $0xa8] sm:$0xff]  ;;  %v358_v46 = vld [vmem:[#allocation5 + $0xa0] sm:$0xff]  ;;  %v373_v48 = vld [vmem:[#allocation5 + $0x118] sm:$0xff] }
  0x3f   : > { %483 = vmatpush.msra.mxu0 %v346_v29  ;;  %542 = vmatpush.msra.mxu3 %v395_v31  ;;  %v391_v47 = vld [vmem:[#allocation5 + $0x1a8] sm:$0xff]  ;;  %v341_v49 = vld [vmem:[#allocation5 + $0x18] sm:$0xff]  ;;  %v390_v51 = vld [vmem:[#allocation5 + $0x1a0] sm:$0xff] }
  0x40   : > { %503 = vmatpush.msra.mxu1 %v362_v30  ;;  %524 = vmatpush.msra.mxu2 %v377_v32  ;;  %v357_v50 = vld [vmem:[#allocation5 + $0x98] sm:$0xff]  ;;  %v372_v52 = vld [vmem:[#allocation5 + $0x110] sm:$0xff]  ;;  %v371_v56 = vld [vmem:[#allocation5 + $0x108] sm:$0xff] }
  0x41   : > { %484 = vmatpush.msra.mxu0 %v345_v33  ;;  %543 = vmatpush.msra.mxu3 %v394_v35  ;;  %v340_v53 = vld [vmem:[#allocation5 + $0x10] sm:$0xff]  ;;  %v389_v55 = vld [vmem:[#allocation5 + $0x198] sm:$0xff]  ;;  %v339_v57 = vld [vmem:[#allocation5 + $0x8] sm:$0xff] }
  0x42   : > { %504 = vmatpush.msra.mxu1 %v361_v34  ;;  %525 = vmatpush.msra.mxu2 %v376_v36  ;;  %v356_v54 = vld [vmem:[#allocation5 + $0x90] sm:$0xff]  ;;  %v355_v58 = vld [vmem:[#allocation5 + $0x88] sm:$0xff]  ;;  %v370_v60 = vld [vmem:[#allocation5 + $0x100] sm:$0xff] }
  0x43   : > { %485 = vmatpush.msra.mxu0 %v344_v37  ;;  %544 = vmatpush.msra.mxu3 %v393_v39  ;;  %v388_v59 = vld [vmem:[#allocation5 + $0x190] sm:$0xff]  ;;  %v338_v61 = vld [vmem:[#allocation5] sm:$0xff]  ;;  %v449_v62 = vld [vmem:[#allocation5 + $0x378] sm:$0xff] }
  0x44   : > { %505 = vmatpush.msra.mxu1 %v360_v38  ;;  %526 = vmatpush.msra.mxu2 %v375_v40  ;;  %v417_v63 = vld [vmem:[#allocation5 + $0x278] sm:$0xff]  ;;  %v354_v0 = vld [vmem:[#allocation5 + $0x80] sm:$0xff]  ;;  %v387_v1 = vld [vmem:[#allocation5 + $0x188] sm:$0xff] }
  0x45   : > { %486 = vmatpush.msra.mxu0 %v343_v41  ;;  %545 = vmatpush.msra.mxu3 %v392_v43  ;;  %v448_v2 = vld [vmem:[#allocation5 + $0x370] sm:$0xff]  ;;  %v433_v4 = vld [vmem:[#allocation5 + $0x2f8] sm:$0xff]  ;;  %v386_v5 = vld [vmem:[#allocation5 + $0x180] sm:$0xff] }
  0x46   : > { %506 = vmatpush.msra.mxu1 %v359_v42  ;;  %527 = vmatpush.msra.mxu2 %v374_v44  ;;  %v416_v3 = vld [vmem:[#allocation5 + $0x270] sm:$0xff]  ;;  %v447_v6 = vld [vmem:[#allocation5 + $0x368] sm:$0xff]  ;;  %v446_v10 = vld [vmem:[#allocation5 + $0x360] sm:$0xff] }
  0x47   : > { %487 = vmatpush.msra.mxu0 %v342_v45  ;;  %546 = vmatpush.msra.mxu3 %v391_v47  ;;  %v415_v7 = vld [vmem:[#allocation5 + $0x268] sm:$0xff]  ;;  %v432_v8 = vld [vmem:[#allocation5 + $0x2f0] sm:$0xff]  ;;  %v414_v11 = vld [vmem:[#allocation5 + $0x260] sm:$0xff] }
  0x48   : > { %507 = vmatpush.msra.mxu1 %v358_v46  ;;  %528 = vmatpush.msra.mxu2 %v373_v48  ;;  %v463_v9 = vld [vmem:[#allocation5 + $0x3e8] sm:$0x3]  ;;  %v462_v13 = vld [vmem:[#allocation5 + $0x3e0] sm:$0xff]  ;;  %v445_v14 = vld [vmem:[#allocation5 + $0x358] sm:$0xff] }
  0x49   : > { %488 = vmatpush.msra.mxu0 %v341_v49  ;;  %547 = vmatpush.msra.mxu3 %v390_v51  ;;  %v431_v12 = vld [vmem:[#allocation5 + $0x2e8] sm:$0xff]  ;;  %v413_v15 = vld [vmem:[#allocation5 + $0x258] sm:$0xff]  ;;  %v430_v16 = vld [vmem:[#allocation5 + $0x2e0] sm:$0xff] }
  0x4a   : > { %508 = vmatpush.msra.mxu1 %v357_v50  ;;  %529 = vmatpush.msra.mxu2 %v372_v52  ;;  %v461_v17 = vld [vmem:[#allocation5 + $0x3d8] sm:$0xff]  ;;  %v444_v18 = vld [vmem:[#allocation5 + $0x350] sm:$0xff]  ;;  %v443_v22 = vld [vmem:[#allocation5 + $0x348] sm:$0xff] }
  0x4b   : > { %489 = vmatpush.msra.mxu0 %v340_v53  ;;  %548 = vmatpush.msra.mxu3 %v389_v55  ;;  %v412_v19 = vld [vmem:[#allocation5 + $0x250] sm:$0xff]  ;;  %v429_v20 = vld [vmem:[#allocation5 + $0x2d8] sm:$0xff]  ;;  %v411_v23 = vld [vmem:[#allocation5 + $0x248] sm:$0xff] }
  0x4c   : > { %509 = vmatpush.msra.mxu1 %v356_v54  ;;  %530 = vmatpush.msra.mxu2 %v371_v56  ;;  %v460_v21 = vld [vmem:[#allocation5 + $0x3d0] sm:$0xff]  ;;  %v459_v25 = vld [vmem:[#allocation5 + $0x3c8] sm:$0xff]  ;;  %v442_v26 = vld [vmem:[#allocation5 + $0x340] sm:$0xff] }
  0x4d   : > { %490 = vmatpush.msra.mxu0 %v339_v57  ;;  %549 = vmatpush.msra.mxu3 %v388_v59  ;;  %v428_v24 = vld [vmem:[#allocation5 + $0x2d0] sm:$0xff]  ;;  %v410_v27 = vld [vmem:[#allocation5 + $0x240] sm:$0xff]  ;;  %v427_v28 = vld [vmem:[#allocation5 + $0x2c8] sm:$0xff] }
  0x4e   : > { %510 = vmatpush.msra.mxu1 %v355_v58  ;;  %531 = vmatpush.msra.mxu2 %v370_v60  ;;  %v458_v29 = vld [vmem:[#allocation5 + $0x3c0] sm:$0xff]  ;;  %v441_v30 = vld [vmem:[#allocation5 + $0x338] sm:$0xff]  ;;  %v440_v34 = vld [vmem:[#allocation5 + $0x330] sm:$0xff] }
  0x4f   : > { %491 = vmatpush.msra.mxu0 %v338_v61  ;;  %550 = vmatpush.msra.mxu3 %v387_v1  ;;  %v409_v31 = vld [vmem:[#allocation5 + $0x238] sm:$0xff]  ;;  %v426_v32 = vld [vmem:[#allocation5 + $0x2c0] sm:$0xff]  ;;  %v408_v35 = vld [vmem:[#allocation5 + $0x230] sm:$0xff] }
  0x50   : > { %596 = vmatpush.msrb.mxu2 %v449_v62  ;;  %511 = vmatpush.msra.mxu1 %v354_v0  ;;  %v457_v33 = vld [vmem:[#allocation5 + $0x3b8] sm:$0xff]  ;;  %v456_v37 = vld [vmem:[#allocation5 + $0x3b0] sm:$0xff]  ;;  %v439_v38 = vld [vmem:[#allocation5 + $0x328] sm:$0xff] }
  0x51   : > { %556 = vmatpush.msrb.mxu0 %v417_v63  ;;  %551 = vmatpush.msra.mxu3 %v386_v5  ;;  %v425_v36 = vld [vmem:[#allocation5 + $0x2b8] sm:$0xff]  ;;  %v407_v39 = vld [vmem:[#allocation5 + $0x228] sm:$0xff]  ;;  %v424_v40 = vld [vmem:[#allocation5 + $0x2b0] sm:$0xff] }
  0x52   : > { %597 = vmatpush.msrb.mxu2 %v448_v2  ;;  %576 = vmatpush.msrb.mxu1 %v433_v4  ;;  %v455_v41 = vld [vmem:[#allocation5 + $0x3a8] sm:$0xff]  ;;  %v438_v42 = vld [vmem:[#allocation5 + $0x320] sm:$0xff]  ;;  %v332_v44 = vld [vmem:[%s1229_s11 + $0x10] sm:$0xff] }
  0x53   : > { %557 = vmatpush.msrb.mxu0 %v416_v3  ;;  %877 = vmatpush.msk.msrb.mxu3 %vm472_vm0, %v463_v9  ;;  %v406_v43 = vld [vmem:[#allocation5 + $0x220] sm:$0xff]  ;;  %v423_v45 = vld [vmem:[#allocation5 + $0x2a8] sm:$0xff]  ;;  %v437_v46 = vld [vmem:[#allocation5 + $0x318] sm:$0xff] }
  0x54   : > { %598 = vmatpush.msrb.mxu2 %v447_v6  ;;  %577 = vmatpush.msrb.mxu1 %v432_v8  ;;  %v454_v47 = vld [vmem:[#allocation5 + $0x3a0] sm:$0xff]  ;;  %v333_v49 = vld [vmem:[%s1229_s11 + $0x18] sm:$0xff]  ;;  %v436_v52 = vld [vmem:[#allocation5 + $0x310] sm:$0xff] }
  0x55   : > { %558 = vmatpush.msrb.mxu0 %v415_v7  ;;  %619 = vmatpush.msrb.mxu3 %v462_v13  ;;  %v330_v48 = vld [vmem:[%s1229_s11] sm:$0xff]  ;;  %v405_v50 = vld [vmem:[#allocation5 + $0x218] sm:$0xff]  ;;  %v331_v54 = vld [vmem:[%s1229_s11 + $0x8] sm:$0xff] }
  0x56   : > { %599 = vmatpush.msrb.mxu2 %v446_v10  ;;  %578 = vmatpush.msrb.mxu1 %v431_v12  ;;  %v422_v51 = vld [vmem:[#allocation5 + $0x2a0] sm:$0xff]  ;;  %v453_v53 = vld [vmem:[#allocation5 + $0x398] sm:$0xff]  ;;  %v404_v55 = vld [vmem:[#allocation5 + $0x210] sm:$0xff] }
  0x57   : > { %559 = vmatpush.msrb.mxu0 %v414_v11  ;;  %620 = vmatpush.msrb.mxu3 %v461_v17  ;;  %v421_v56 = vld [vmem:[#allocation5 + $0x298] sm:$0xff]  ;;  %v435_v57 = vld [vmem:[#allocation5 + $0x308] sm:$0xff]  ;;  %v452_v58 = vld [vmem:[#allocation5 + $0x390] sm:$0xff] }
  0x58   : > { %600 = vmatpush.msrb.mxu2 %v445_v14  ;;  %579 = vmatpush.msrb.mxu1 %v430_v16  ;;  %v403_v59 = vld [vmem:[#allocation5 + $0x208] sm:$0xff]  ;;  %v420_v60 = vld [vmem:[#allocation5 + $0x290] sm:$0xff]  ;;  %v434_v61 = vld [vmem:[#allocation5 + $0x300] sm:$0xff] }
  0x59   : > { %560 = vmatpush.msrb.mxu0 %v413_v15  ;;  %621 = vmatpush.msrb.mxu3 %v460_v21  ;;  %v451_v62 = vld [vmem:[#allocation5 + $0x388] sm:$0xff]  ;;  %v336_v63 = vld [vmem:[%s1229_s11 + $0x30] sm:$0xff]  ;;  %v402_v0 = vld [vmem:[#allocation5 + $0x200] sm:$0xff] }
  0x5a   : > { %601 = vmatpush.msrb.mxu2 %v444_v18  ;;  %580 = vmatpush.msrb.mxu1 %v429_v20  ;;  %v419_v1 = vld [vmem:[#allocation5 + $0x288] sm:$0xff]  ;;  %v450_v2 = vld [vmem:[#allocation5 + $0x380] sm:$0xff]  ;;  %v337_v4 = vld [vmem:[%s1229_s11 + $0x38] sm:$0xff] }
  0x5b   : > { %561 = vmatpush.msrb.mxu0 %v412_v19  ;;  %622 = vmatpush.msrb.mxu3 %v459_v25  ;;  %v334_v3 = vld [vmem:[%s1229_s11 + $0x20] sm:$0xff]  ;;  %v335_v6 = vld [vmem:[%s1229_s11 + $0x28] sm:$0xff]  ;;  %v668_v9 = vld [vmem:[#allocation7 + $0x68] sm:$0xff] }
  0x5c   : > { %602 = vmatpush.msrb.mxu2 %v443_v22  ;;  %581 = vmatpush.msrb.mxu1 %v428_v24  ;;  %v418_v5 = vld [vmem:[#allocation5 + $0x280] sm:$0xff]  ;;  %v670_v7 = vld [vmem:[#allocation7 + $0x78] sm:$0xff]  ;;  %v667_v10 = vld [vmem:[#allocation7 + $0x60] sm:$0xff] }
  0x5d   : > { %562 = vmatpush.msrb.mxu0 %v411_v23  ;;  %623 = vmatpush.msrb.mxu3 %v458_v29  ;;  %v669_v8 = vld [vmem:[#allocation7 + $0x70] sm:$0xff]  ;;  %v666_v11 = vld [vmem:[#allocation7 + $0x58] sm:$0xff]  ;;  %v664_v13 = vld [vmem:[#allocation7 + $0x48] sm:$0xff] }
  0x5e   : > { %603 = vmatpush.msrb.mxu2 %v442_v26  ;;  %582 = vmatpush.msrb.mxu1 %v427_v28  ;;  %v665_v12 = vld [vmem:[#allocation7 + $0x50] sm:$0xff]  ;;  %v950_v14 = vld [vmem:[%s1276_s2] ss:$0 sm:$0xff]  ;;  %v663_v15 = vld [vmem:[#allocation7 + $0x40] sm:$0xff] }
  0x5f   : > { %563 = vmatpush.msrb.mxu0 %v410_v27  ;;  %624 = vmatpush.msrb.mxu3 %v457_v33  ;;  %v662_v16 = vld [vmem:[#allocation7 + $0x38] sm:$0xff]  ;;  %v661_v17 = vld [vmem:[#allocation7 + $0x30] sm:$0xff]  ;;  %v660_v20 = vld [vmem:[#allocation7 + $0x28] sm:$0xff] }
  0x60   : > { %604 = vmatpush.msrb.mxu2 %v441_v30  ;;  %583 = vmatpush.msrb.mxu1 %v426_v32  ;;  %v659_v22 = vld [vmem:[#allocation7 + $0x20] sm:$0xff]  ;;  %v658_v25 = vld [vmem:[#allocation7 + $0x18] sm:$0xff]  ;;  %v657_v28 = vld [vmem:[#allocation7 + $0x10] sm:$0xff] }
  0x61   : > { %564 = vmatpush.msrb.mxu0 %v409_v31  ;;  %625 = vmatpush.msrb.mxu3 %v456_v37  ;;  %v656_v31 = vld [vmem:[#allocation7 + $0x8] sm:$0xff] }
  0x62   : > { %605 = vmatpush.msrb.mxu2 %v440_v34  ;;  %584 = vmatpush.msrb.mxu1 %v425_v36  ;;  %v655_v34 = vld [vmem:[#allocation7] sm:$0xff] }
  0x63   : > { %565 = vmatpush.msrb.mxu0 %v408_v35  ;;  %626 = vmatpush.msrb.mxu3 %v455_v41 }
  0x64   : > { %606 = vmatpush.msrb.mxu2 %v439_v38  ;;  %585 = vmatpush.msrb.mxu1 %v424_v40 }
  0x65   : > { %566 = vmatpush.msrb.mxu0 %v407_v39  ;;  %532 = vmatmul.f32.vlgmr.msra.gmra.mxu2 %v332_v44 }
  0x66   : > { %607 = vmatpush.msrb.mxu2 %v438_v42  ;;  %586 = vmatpush.msrb.mxu1 %v423_v45 }
  0x67   : > { %567 = vmatpush.msrb.mxu0 %v406_v43  ;;  %627 = vmatpush.msrb.mxu3 %v454_v47 }
  0x68   : > { %608 = vmatpush.msrb.mxu2 %v437_v46  ;;  %492 = vmatmul.f32.vlgmr.msra.gmra.mxu0 %v330_v48 }
  0x69   : > { %552 = vmatmul.f32.vlgmr.msra.gmra.mxu3 %v333_v49  ;;  %568 = vmatpush.msrb.mxu0 %v405_v50 }
  0x6a   : > { %587 = vmatpush.msrb.mxu1 %v422_v51  ;;  %609 = vmatpush.msrb.mxu2 %v436_v52 }
  0x6b   : > { %628 = vmatpush.msrb.mxu3 %v453_v53  ;;  %512 = vmatmul.f32.vlgmr.msra.gmra.mxu1 %v331_v54  ;;  %v951_v53 = vld [vmem:[%s1278_s4] ss:$0 sm:$0xff] }
  0x6c   : > { %569 = vmatpush.msrb.mxu0 %v404_v55  ;;  %588 = vmatpush.msrb.mxu1 %v421_v56  ;;  %v735_v56 = vld [vmem:[#allocation2] sm:$0x1] }
  0x6d   : > { %610 = vmatpush.msrb.mxu2 %v435_v57  ;;  %629 = vmatpush.msrb.mxu3 %v452_v58  ;;  %v1102_v58 = vmov 0  }
  0x6e   : > { %570 = vmatpush.msrb.mxu0 %v403_v59  ;;  %589 = vmatpush.msrb.mxu1 %v420_v60 }
  0x6f   : > { %611 = vmatpush.msrb.mxu2 %v434_v61  ;;  %630 = vmatpush.msrb.mxu3 %v451_v62 }
  0x70   : > { %612 = vmatmul.f32.vlgmr.msrb.gmra.mxu2 %v336_v63  ;;  %571 = vmatpush.msrb.mxu0 %v402_v0 }
  0x71   : > { %590 = vmatpush.msrb.mxu1 %v419_v1  ;;  %631 = vmatpush.msrb.mxu3 %v450_v2 }
  0x72   : > { %572 = vmatmul.f32.vlgmr.msrb.gmra.mxu0 %v334_v3  ;;  %878 = vmatmul.msk.f32.vlgmr.msrb.gmra.mxu3 %vm468_vm1, %v337_v4  ;;  %vm785_vm1 = vcmask 57344  }
  0x73   : > { %591 = vmatpush.msrb.mxu1 %v418_v5  ;;  %675 = vmatpush.msra.mxu3 %v670_v7  ;;  %v714_v7 = vld [vmem:[%s1279_s5] sm:$0x3] }
  0x74   : > { %592 = vmatmul.f32.vlgmr.msrb.gmra.mxu1 %v335_v6  ;;  %949 = vset.pattern.permute.xlu0 %v1102_v58 }
  0x75   : > { %676 = vmatpush.msra.mxu3 %v669_v8  ;;  %738 = vperm.xlu0 %949, %v735_v56  }
  0x77   : > { %677 = vmatpush.msra.mxu3 %v668_v9 }
  0x79   : > { %678 = vmatpush.msra.mxu3 %v667_v10 }
  0x7b   : > { %679 = vmatpush.msra.mxu3 %v666_v11 }
  0x7d   : > { %680 = vmatpush.msra.mxu3 %v665_v12 }
  0x7f   : > { %681 = vmatpush.msra.mxu3 %v664_v13 }
  0x81   : > { %682 = vmatpush.msra.mxu3 %v663_v15 }
  0x83   : > { %683 = vmatpush.msra.mxu3 %v662_v16 }
  0x85   : > { %684 = vmatpush.msra.mxu3 %v661_v17 }
  0x87   : > { %685 = vmatpush.msra.mxu3 %v660_v20 }
  0x89   : > { %686 = vmatpush.msra.mxu3 %v659_v22 }
  0x8b   : > { %687 = vmatpush.msra.mxu3 %v658_v25 }
  0x8d   : > { %688 = vmatpush.msra.mxu3 %v657_v28 }
  0x8f   : > { %689 = vmatpush.msra.mxu3 %v656_v31 }
  0x91   : > { %690 = vmatpush.msra.mxu3 %v655_v34 }
  0xe5   : > { %v493_v18 = vpop.f32.mrf.mxu0 }
  0xe6   : > { %v494_v19 = vadd.f32 %v950_v14, %v493_v18 }
  0xe7   : > { %v739_v8 = vpop.permute.xlu0 %738 }
  0xe8   : > { %v513_v21 = vpop.f32.mrf.mxu1  ;;  %v533_v24 = vpop.f32.mrf.mxu2  ;;  %v741_v9 = vperm.slane %v739_v8, 0 }
  0xe9   : > { %v514_v23 = vadd.f32 %v513_v21, %v494_v19 }
  0xeb   : > { %v534_v26 = vadd.f32 %v533_v24, %v514_v23 }
  0xec   : > { %v553_v27 = vpop.f32.mrf.mxu3 }
  0xed   : > { %v554_v29 = vadd.f32 %v553_v27, %v534_v26 }
  0xef   : > { %v573_v30 = vpop.f32.mrf.mxu0 }
  0xf0   : > { %v574_v32 = vadd.f32 %v573_v30, %v554_v29 }
  0xf1   : > { %v593_v33 = vpop.f32.mrf.mxu1 }
  0xf2   : > { %v594_v35 = vadd.f32 %v593_v33, %v574_v32 }
  0xf3   : > { %v613_v36 = vpop.f32.mrf.mxu2 }
  0xf4   : > { %v614_v37 = vadd.f32 %v613_v36, %v594_v35 }
  0xf5   : > { %v633_v38 = vpop.f32.mrf.mxu3 }
  0xf6   : > { %v634_v39 = vadd.f32 %v633_v38, %v614_v37 }
  0xf8   : > { %v879_v40 = vmul.f32 -1.442695, %v634_v39 }
  0xfa   : > { %952 = vpow2.f32 %v879_v40 }
 0x100   : > { %v953_v41 = vpop.eup %952 }
 0x101   : > { %v639_v42 = vadd.f32 1.0, %v953_v41 }
 0x103   : > { %954 = vrcp.f32 %v639_v42  ;;  %v651_v46 = vand.u32 2147483648, %v639_v42  ;;  %v649_v48 = vand.u32 2147483647, %v639_v42  ;;  %vm645_vm3 = vweird.f32 %v639_v42 }
 0x105   : > { %v652_v50 = vor.u32 1.1754944e-38, %v651_v46  ;;  %vm650_vm5 = vcmp.eq.f32.partialorder %v649_v48, 8.507059e+37 }
 0x109   : > { %v955_v43 = vpop.eup %954 }
 0x10a   : > { %v641_v44 = vmul.f32 %v955_v43, %v639_v42  ;;  %vm646_vm2 = vweird.f32 %v955_v43 }
 0x10b   : > { %vm647_vm4 = vmor %vm645_vm3, %vm646_vm2 }
 0x10c   : > { %v642_v45 = vsub.f32 1.0, %v641_v44 }
 0x10e   : > { %v643_v47 = vmul.f32 %v955_v43, %v642_v45 }
 0x110   : > { %v644_v49 = vadd.f32 %v955_v43, %v643_v47 }
 0x112   : > { %v648_v51 = vsel %vm647_vm4, %v955_v43, %v644_v49 }
 0x113   : > { %v653_v52 = vsel %vm650_vm5, %v652_v50, %v648_v51 }
 0x114   : > { %691 = vmatmul.f32.vlgmr.msra.gmra.mxu3 %v653_v52 }
 0x197   : > { %v692_v54 = vpop.f32.mrf.mxu3 }
 0x198   : > { %v693_v55 = vadd.f32 %v951_v53, %v692_v54 }
 0x19a   : > { %v880_v57 = vmul.f32 -1.442695, %v693_v55 }
 0x19c   : > { %956 = vpow2.f32 %v880_v57 }
 0x1a2   : > { %v957_v59 = vpop.eup %956 }
 0x1a3   : > { %v698_v60 = vadd.f32 1.0, %v957_v59 }
 0x1a5   : > { %958 = vrcp.f32 %v698_v60  ;;  %v710_v0 = vand.u32 2147483648, %v698_v60  ;;  %v708_v2 = vand.u32 2147483647, %v698_v60  ;;  %vm704_vm7 = vweird.f32 %v698_v60 }
 0x1a7   : > { %v711_v4 = vor.u32 1.1754944e-38, %v710_v0  ;;  %vm709_vm9 = vcmp.eq.f32.partialorder %v708_v2, 8.507059e+37 }
 0x1ab   : > { %v959_v61 = vpop.eup %958 }
 0x1ac   : > { %v700_v62 = vmul.f32 %v959_v61, %v698_v60  ;;  %vm705_vm6 = vweird.f32 %v959_v61 }
 0x1ad   : > { %vm706_vm8 = vmor %vm704_vm7, %vm705_vm6 }
 0x1ae   : > { %v701_v63 = vsub.f32 1.0, %v700_v62 }
 0x1b0   : > { %v702_v1 = vmul.f32 %v959_v61, %v701_v63 }
 0x1b2   : > { %v703_v3 = vadd.f32 %v959_v61, %v702_v1 }
 0x1b4   : > { %v707_v5 = vsel %vm706_vm8, %v959_v61, %v703_v3 }
 0x1b5   : > { %v712_v6 = vsel %vm709_vm9, %v711_v4, %v707_v5 }
 0x1b6   : > { %730 = vmatpush.xpose.msra.mxu0 %v712_v6 }
 0x1b9   : > { %731 = vmatmul.f32.vlgmr.msra.gmra.mxu0 %v714_v7 }
 0x236   : > { %v732_v10 = vpop.f32.mrf.mxu0 }
 0x237   : > { %v742_v11 = vadd.f32 %v741_v9, %v732_v10  ;;  %v763_v24 = vrot.slane %v732_v10, 1 }
 0x239   : > { %v881_v12 = vmul.f32 -1.442695, %v742_v11 }
 0x23b   : > { %960 = vpow2.f32 %v881_v12 }
 0x241   : > { %v961_v13 = vpop.eup %960 }
 0x242   : > { %v746_v14 = vadd.f32 1.0, %v961_v13 }
 0x244   : > { %962 = vrcp.f32 %v746_v14  ;;  %v758_v18 = vand.u32 2147483648, %v746_v14  ;;  %v756_v20 = vand.u32 2147483647, %v746_v14  ;;  %vm752_vm11 = vweird.f32 %v746_v14 }
 0x246   : > { %v759_v22 = vor.u32 1.1754944e-38, %v758_v18  ;;  %vm757_vm13 = vcmp.eq.f32.partialorder %v756_v20, 8.507059e+37 }
 0x24a   : > { %v963_v15 = vpop.eup %962 }
 0x24b   : > { %v748_v16 = vmul.f32 %v963_v15, %v746_v14  ;;  %vm753_vm10 = vweird.f32 %v963_v15 }
 0x24c   : > { %vm754_vm12 = vmor %vm752_vm11, %vm753_vm10 }
 0x24d   : > { %v749_v17 = vsub.f32 1.0, %v748_v16 }
 0x24f   : > { %v750_v19 = vmul.f32 %v963_v15, %v749_v17 }
 0x251   : > { %v751_v21 = vadd.f32 %v963_v15, %v750_v19 }
 0x253   : > { %v755_v23 = vsel %vm754_vm12, %v963_v15, %v751_v21 }
 0x254   : > { %v760_v25 = vsel %vm757_vm13, %v759_v22, %v755_v23 }
 0x255   : > { %v765_v26 = vmul.f32 %v763_v24, %v760_v25 }
 0x257   : > { %v882_v27 = vmul.f32 -1.442695, %v765_v26 }
 0x259   : > { %964 = vpow2.f32 %v882_v27 }
 0x25f   : > { %v965_v28 = vpop.eup %964 }
 0x260   : > { %v769_v29 = vadd.f32 1.0, %v965_v28 }
 0x262   : > { %966 = vrcp.f32 %v769_v29  ;;  %v781_v33 = vand.u32 2147483648, %v769_v29  ;;  %v779_v35 = vand.u32 2147483647, %v769_v29  ;;  %vm775_vm15 = vweird.f32 %v769_v29 }
 0x264   : > { %v782_v37 = vor.u32 1.1754944e-38, %v781_v33  ;;  %vm780_vm2 = vcmp.eq.f32.partialorder %v779_v35, 8.507059e+37 }
 0x268   : > { %v967_v30 = vpop.eup %966 }
 0x269   : > { %v771_v31 = vmul.f32 %v967_v30, %v769_v29  ;;  %vm776_vm14 = vweird.f32 %v967_v30 }
 0x26a   : > { %vm777_vm0 = vmor %vm775_vm15, %vm776_vm14 }
 0x26b   : > { %v772_v32 = vsub.f32 1.0, %v771_v31 }
 0x26d   : > { %v773_v34 = vmul.f32 %v967_v30, %v772_v32 }
 0x26f   : > { %v774_v36 = vadd.f32 %v967_v30, %v773_v34 }
 0x271   : > { %v778_v38 = vsel %vm777_vm0, %v967_v30, %v774_v36 }
 0x272   : > { %v783_v39 = vsel %vm780_vm2, %v782_v37, %v778_v38 }
 0x273   : > { %786 = vst.msk [vmem:[%s329_s17] sm:$0x1] %vm785_vm1, %v783_v39 }
 0x274 PF: > { %p20_p3 = scmp.ge.s32.totalorder %s1187_s20, 4   ;;  %s1285_s26 = smov %s1088_s27 }
 0x275   : > { %s1286_s27 = smov %s1092_s28  ;;  %s1287_s28 = smov %s1198_s23 }
 0x276   : > { %s1288_s29 = smov %s1187_s20  ;;  %22 = sbr.rel (!%p20_p3) target bundleno = 7 (0x7), region = 96 }
 0x27b   :  { %804 = vsyncpa [#allocation4], 1 }
 0x27c   :  { %806 = vsyncpa [#allocation4 + $0x1], 1 }
 0x27d   :  { %807 = vsyncpa [#allocation6], 1 }

</bundles_post_ra>
